<compile_context>
chip_gen: v6e
topology: v6e:2x2x1
jax: 0.10.0
libtpu: 0.0.40
codegen_flags: <defaults>
</compile_context>

<pallas_src>
import functools

import jax
import jax.numpy as jnp
from jax import lax
from jax.experimental import pallas as pl
from jax.experimental.pallas import tpu as pltpu

_EPS = 1e-5  # nn.BatchNorm2d default


# ----------------------------------------------------------------------------- kernels
def _fused_kernel(x_ref, gb_ref, o_ref, *, n):
    # x_ref : (B, Cb, HWp)   all batches & (padded) spatial, one slab of channels
    # gb_ref: (B, Cb, 2)     [:, :, 0] = gamma, [:, :, 1] = beta  (per sample, channel)
    # o_ref : (B, Cb, HWp)
    # n     : true element count per channel (B * H * W), excludes lane padding.
    x = x_ref[...].astype(jnp.float32)

    # One-pass per-channel batch statistics (biased variance, matches BN normalization).
    ssum = jnp.sum(x, axis=(0, 2), keepdims=True)          # (1, Cb, 1)
    ssq = jnp.sum(x * x, axis=(0, 2), keepdims=True)       # (1, Cb, 1)
    mean = ssum * (1.0 / n)
    var = jnp.maximum(ssq * (1.0 / n) - mean * mean, 0.0)  # clamp: cancellation guard
    inv = lax.rsqrt(var + _EPS)

    # Fold normalization + conditional affine into one scale/shift FMA pass.
    gamma = gb_ref[:, :, 0:1].astype(jnp.float32)           # (B, Cb, 1)
    beta = gb_ref[:, :, 1:2].astype(jnp.float32)
    scale = gamma * inv
    shift = beta - mean * scale
    o_ref[...] = (x * scale + shift).astype(o_ref.dtype)


def _stats_kernel(x_ref, s_ref, *, n):
    # Two-pass fallback, pass 1: accumulate per-channel sum / sum-of-squares over
    # batch tiles (trailing "arbitrary" grid axis), finalize to (mean, inv_std).
    # x_ref: (Bb, Cb, HWp)   s_ref: (1, Cb, 2) f32, resident across the batch axis.
    bi = pl.program_id(1)
    x = x_ref[...].astype(jnp.float32)
    ssum = jnp.sum(x, axis=(0, 2), keepdims=True)           # (1, Cb, 1)
    ssq = jnp.sum(x * x, axis=(0, 2), keepdims=True)        # (1, Cb, 1)

    @pl.when(bi == 0)
    def _():
        s_ref[...] = jnp.zeros_like(s_ref)

    s_ref[...] += jnp.concatenate([ssum, ssq], axis=-1)

    @pl.when(bi == pl.num_programs(1) - 1)
    def _():
        tot = s_ref[...]
        mean = tot[:, :, 0:1] * (1.0 / n)
        var = jnp.maximum(tot[:, :, 1:2] * (1.0 / n) - mean * mean, 0.0)
        inv = lax.rsqrt(var + _EPS)
        s_ref[...] = jnp.concatenate([mean, inv], axis=-1)


def _apply_kernel(x_ref, gb_ref, s_ref, o_ref):
    # Two-pass fallback, pass 2: apply folded scale/shift. All grid axes parallel.
    # x_ref: (Bb, Cb, HWp)  gb_ref: (Bb, Cb, 2)  s_ref: (1, Cb, 2)  o_ref like x_ref.
    x = x_ref[...].astype(jnp.float32)
    mean = s_ref[:, :, 0:1]
    inv = s_ref[:, :, 1:2]
    gamma = gb_ref[:, :, 0:1].astype(jnp.float32)
    beta = gb_ref[:, :, 1:2].astype(jnp.float32)
    scale = gamma * inv
    shift = beta - mean * scale
    o_ref[...] = (x * scale + shift).astype(o_ref.dtype)


# ----------------------------------------------------------------------------- wrapper
def _vmem_budget():
    """(vmem_limit_bytes, per-block byte cap), generation-aware with a safe fallback."""
    try:
        info = pltpu.get_tpu_info()
        phys = int(getattr(info, "vmem_capacity_bytes", 0)) or (64 << 20)
    except Exception:  # no hardware query available -> assume the tightest (v7x)
        phys = 64 << 20
    vmem_limit = min(int(phys * 0.7), 64 << 20)   # v7x ~45 MiB, v5e/v6e 64 MiB
    block_cap = max(vmem_limit // 6, 1 << 20)     # 2x in + 2x out double-buffers + slack
    return vmem_limit, block_cap


@functools.partial(jax.jit, static_argnames=("force_two_pass",))
def conditional_batchnorm2d(x_nchw, y, embed_weight, *, force_two_pass=False):
    """Forward of ConditionalBatchNorm2d (training-mode batch statistics)."""
    B, C, H, W = x_nchw.shape
    HW = H * W
    itemsize = x_nchw.dtype.itemsize
    vmem_limit, block_cap = _vmem_budget()

    # Lane-density guard: keep the last axis a multiple of 128 (unmasked vst).
    HW_pad = HW if HW % 128 == 0 else ((HW + 127) // 128) * 128
    x3 = x_nchw.reshape(B, C, HW)                    # contiguous reshape, no transpose
    if HW_pad != HW:
        x3 = jnp.pad(x3, ((0, 0), (0, 0), (0, HW_pad - HW)))  # zeros are stat-neutral

    # Embedding row gather (B rows of 2C) is tiny glue done outside the kernel.
    # TODO(synk): could be folded in via PrefetchScalarGridSpec(num_scalar_prefetch=1)
    # + pl.Element gather; only matters for very small feature maps.
    gb = jnp.take(embed_weight, y, axis=0)           # (B, 2C)
    gb3 = jnp.stack([gb[:, :C], gb[:, C:]], axis=-1)  # (B, C, 2): one DMA, not two

    # Channel-block start obeys packed-sublane tiles for sub-32-bit dtypes.
    c_start = {4: 8, 2: 16, 1: 32}.get(itemsize, 8)
    c_min = C if (C < c_start or C % c_start != 0) else c_start
    n_true = float(B * HW)

    fused_fits = B * c_min * HW_pad * itemsize <= block_cap
    if fused_fits and not force_two_pass:
        # ---------------- fused single-pass path: one HBM read + one HBM write of x.
        c_blk = c_min
        if c_min < C:
            # Grow the block but keep >=2 "parallel" grid steps (v7x megacore).
            while (C % (c_blk * 2) == 0
                   and C // (c_blk * 2) >= 2
                   and B * (c_blk * 2) * HW_pad * itemsize <= block_cap):
                c_blk *= 2
        out3 = pl.pallas_call(
            functools.partial(_fused_kernel, n=n_true),
            out_shape=jax.ShapeDtypeStruct((B, C, HW_pad), x_nchw.dtype),
            grid_spec=pltpu.PrefetchScalarGridSpec(
                num_scalar_prefetch=0,
                grid=(C // c_blk,),
                in_specs=[
                    pl.BlockSpec((B, c_blk, HW_pad), lambda ci: (0, ci, 0)),
                    pl.BlockSpec((B, c_blk, 2), lambda ci: (0, ci, 0)),
                ],
                out_specs=pl.BlockSpec((B, c_blk, HW_pad), lambda ci: (0, ci, 0)),
            ),
            compiler_params=pltpu.CompilerParams(
                dimension_semantics=("parallel",),
                vmem_limit_bytes=vmem_limit),
        )(x3, gb3)
    else:
        # ---------------- two-pass fallback: batch is tiled too (2 reads + 1 write).
        # TODO(synk): extreme single-image H*W that does not fit even a (1, c_min, HW)
        # block would additionally need HW tiling; not implemented.
        b_blk = 1
        for cand in range(B, 0, -1):
            if B % cand == 0 and cand * c_min * HW_pad * itemsize <= block_cap:
                b_blk = cand
                break
        c_blk = c_min
        if c_min < C:
            while (C % (c_blk * 2) == 0
                   and C // (c_blk * 2) >= 2
                   and b_blk * (c_blk * 2) * HW_pad * itemsize <= block_cap):
                c_blk *= 2

        stats = pl.pallas_call(
            functools.partial(_stats_kernel, n=n_true),
            out_shape=jax.ShapeDtypeStruct((1, C, 2), jnp.float32),
            grid_spec=pltpu.PrefetchScalarGridSpec(
                num_scalar_prefetch=0,
                grid=(C // c_blk, B // b_blk),
                in_specs=[pl.BlockSpec((b_blk, c_blk, HW_pad),
                                       lambda ci, bi: (bi, ci, 0))],
                out_specs=pl.BlockSpec((1, c_blk, 2), lambda ci, bi: (0, ci, 0)),
            ),
            compiler_params=pltpu.CompilerParams(
                dimension_semantics=("parallel", "arbitrary"),
                vmem_limit_bytes=vmem_limit),
        )(x3)

        out3 = pl.pallas_call(
            _apply_kernel,
            out_shape=jax.ShapeDtypeStruct((B, C, HW_pad), x_nchw.dtype),
            grid_spec=pltpu.PrefetchScalarGridSpec(
                num_scalar_prefetch=0,
                grid=(C // c_blk, B // b_blk),
                in_specs=[
                    pl.BlockSpec((b_blk, c_blk, HW_pad), lambda ci, bi: (bi, ci, 0)),
                    pl.BlockSpec((b_blk, c_blk, 2), lambda ci, bi: (bi, ci, 0)),
                    pl.BlockSpec((1, c_blk, 2), lambda ci, bi: (0, ci, 0)),
                ],
                out_specs=pl.BlockSpec((b_blk, c_blk, HW_pad),
                                       lambda ci, bi: (bi, ci, 0)),
            ),
            compiler_params=pltpu.CompilerParams(
                dimension_semantics=("parallel", "parallel"),
                vmem_limit_bytes=vmem_limit),
        )(x3, gb3, stats)

    if HW_pad != HW:
        out3 = out3[:, :, :HW]
    return out3.reshape(B, C, H, W)


# --------------------------------------------------------------------------- reference
def _reference(x, y, embed_weight):
    B, C, H, W = x.shape
    mean = jnp.mean(x, axis=(0, 2, 3), keepdims=True)
    var = jnp.mean(jnp.square(x - mean), axis=(0, 2, 3), keepdims=True)
    xn = (x - mean) * lax.rsqrt(var + _EPS)
    gb = embed_weight[y]
    gamma = gb[:, :C].reshape(B, C, 1, 1)
    beta = gb[:, C:].reshape(B, C, 1, 1)
    return gamma * xn + beta


if __name__ == "__main__":
    key = jax.random.PRNGKey(0)
    kx, ky, kg, kb, kx2, ky2 = jax.random.split(key, 6)

    # --- main case (matches the module's typical small test shapes) -------------
    B, C, H, W = 2, 4, 16, 16
    num_classes = 10

    x = jax.random.normal(kx, (B, C, H, W), dtype=jnp.float32)
    y = jax.random.randint(ky, (B,), 0, num_classes, dtype=jnp.int32)
    # Embedding table: gamma half ~ N(1, 0.02) (PyTorch init); beta half small nonzero
    # so the shift path is exercised.
    gamma_tbl = 1.0 + 0.02 * jax.random.normal(kg, (num_classes, C), dtype=jnp.float32)
    beta_tbl = 0.1 * jax.random.normal(kb, (num_classes, C), dtype=jnp.float32)
    embed_weight = jnp.concatenate([gamma_tbl, beta_tbl], axis=1)   # (num_classes, 2C)

    ref = _reference(x, y, embed_weight)

    out = jax.block_until_ready(conditional_batchnorm2d(x, y, embed_weight))
    assert out.shape == (B, C, H, W)
    assert jnp.allclose(out, ref, atol=1e-4, rtol=1e-4), "fused path mismatch"

    # Exercise the large-B*HW two-pass fallback path on the same (small) data.
    out2 = jax.block_until_ready(
        conditional_batchnorm2d(x, y, embed_weight, force_two_pass=True))
    assert jnp.allclose(out2, ref, atol=1e-4, rtol=1e-4), "two-pass path mismatch"

    # Exercise the lane-density guard (H*W not a multiple of 128, e.g. a 7x7 stage).
    B2, C2, H2, W2 = 2, 8, 7, 7
    x_odd = jax.random.normal(kx2, (B2, C2, H2, W2), dtype=jnp.float32)
    y_odd = jax.random.randint(ky2, (B2,), 0, num_classes, dtype=jnp.int32)
    gamma2 = 1.0 + 0.02 * jax.random.normal(kg, (num_classes, C2), dtype=jnp.float32)
    beta2 = 0.1 * jax.random.normal(kb, (num_classes, C2), dtype=jnp.float32)
    ew2 = jnp.concatenate([gamma2, beta2], axis=1)
    out_odd = jax.block_until_ready(conditional_batchnorm2d(x_odd, y_odd, ew2))
    assert jnp.allclose(out_odd, _reference(x_odd, y_odd, ew2),
                        atol=1e-4, rtol=1e-4), "padded-HW path mismatch"

    print("KERNEL_OK")
</pallas_src>

<mosaic_0001>
module attributes {stable_mosaic.version = 11 : i64} {
  func.func @_fused_kernel(%arg0: i32, %arg1: memref<2x4x256xf32, #tpu.memory_space<vmem>>, %arg2: memref<2x4x2xf32, #tpu.memory_space<vmem>>, %arg3: memref<2x4x256xf32, #tpu.memory_space<vmem>>) attributes {dimension_semantics = [#tpu.dimension_semantics<parallel>], iteration_bounds = array<i64: 1>, scalar_prefetch = 0 : i64, scratch_operands = 0 : i64, tpu.core_type = #tpu.core_type<tc>, window_params = [{transform_indices = @transform_0, window_bounds = array<i64: 2, 4, 256>}, {transform_indices = @transform_1, window_bounds = array<i64: 2, 4, 2>}, {transform_indices = @transform_2, window_bounds = array<i64: 2, 4, 256>}]} {
    %c0 = arith.constant 0 : index
    %c0_0 = arith.constant 0 : index
    %c0_1 = arith.constant 0 : index
    %0 = vector.load %arg1[%c0, %c0_0, %c0_1] : memref<2x4x256xf32, #tpu.memory_space<vmem>>, vector<2x4x256xf32>
    %cst = arith.constant dense<0.000000e+00> : vector<4xf32>
    %1 = vector.multi_reduction <add>, %0, %cst [0, 2] : vector<2x4x256xf32> to vector<4xf32>
    %2 = vector.shape_cast %1 : vector<4xf32> to vector<1x4x1xf32>
    %3 = arith.mulf %0, %0 : vector<2x4x256xf32>
    %cst_2 = arith.constant dense<0.000000e+00> : vector<4xf32>
    %4 = vector.multi_reduction <add>, %3, %cst_2 [0, 2] : vector<2x4x256xf32> to vector<4xf32>
    %5 = vector.shape_cast %4 : vector<4xf32> to vector<1x4x1xf32>
    %cst_3 = arith.constant 0.001953125 : f32
    %6 = vector.broadcast %cst_3 : f32 to vector<1x4x1xf32>
    %7 = arith.mulf %2, %6 : vector<1x4x1xf32>
    %cst_4 = arith.constant 0.001953125 : f32
    %8 = vector.broadcast %cst_4 : f32 to vector<1x4x1xf32>
    %9 = arith.mulf %5, %8 : vector<1x4x1xf32>
    %10 = arith.mulf %7, %7 : vector<1x4x1xf32>
    %11 = arith.subf %9, %10 : vector<1x4x1xf32>
    %cst_5 = arith.constant 0.000000e+00 : f32
    %12 = vector.broadcast %cst_5 : f32 to vector<1x4x1xf32>
    %13 = arith.maximumf %11, %12 : vector<1x4x1xf32>
    %cst_6 = arith.constant 9.99999974E-6 : f32
    %14 = vector.broadcast %cst_6 : f32 to vector<1x4x1xf32>
    %15 = arith.addf %13, %14 : vector<1x4x1xf32>
    %16 = math.rsqrt %15 : vector<1x4x1xf32>
    %c0_7 = arith.constant 0 : index
    %c0_8 = arith.constant 0 : index
    %c0_9 = arith.constant 0 : index
    %17 = vector.load %arg2[%c0_7, %c0_8, %c0_9] : memref<2x4x2xf32, #tpu.memory_space<vmem>>, vector<2x4x1xf32>
    %c0_10 = arith.constant 0 : index
    %c0_11 = arith.constant 0 : index
    %c1 = arith.constant 1 : index
    %18 = vector.load %arg2[%c0_10, %c0_11, %c1] : memref<2x4x2xf32, #tpu.memory_space<vmem>>, vector<2x4x1xf32>
    %19 = vector.broadcast %16 : vector<1x4x1xf32> to vector<2x4x1xf32>
    %20 = arith.mulf %17, %19 : vector<2x4x1xf32>
    %21 = vector.broadcast %7 : vector<1x4x1xf32> to vector<2x4x1xf32>
    %22 = arith.mulf %21, %20 : vector<2x4x1xf32>
    %23 = arith.subf %18, %22 : vector<2x4x1xf32>
    %24 = vector.broadcast %20 : vector<2x4x1xf32> to vector<2x4x256xf32>
    %25 = arith.mulf %0, %24 : vector<2x4x256xf32>
    %26 = vector.broadcast %23 : vector<2x4x1xf32> to vector<2x4x256xf32>
    %27 = arith.addf %25, %26 : vector<2x4x256xf32>
    %c0_12 = arith.constant 0 : index
    %c0_13 = arith.constant 0 : index
    %c0_14 = arith.constant 0 : index
    %28 = vector.load %arg3[%c0_12, %c0_13, %c0_14] : memref<2x4x256xf32, #tpu.memory_space<vmem>>, vector<2x4x256xf32>
    tpu.vector_store %arg3[%c0_12, %c0_13, %c0_14], %27 {strides = array<i32>} : memref<2x4x256xf32, #tpu.memory_space<vmem>>, vector<2x4x256xf32>,
    return
  }
  func.func @transform_0(%arg0: i32) -> (i32, i32, i32) {
    %c0_i32 = arith.constant 0 : i32
    %c0_i32_0 = arith.constant 0 : i32
    %c0_i32_1 = arith.constant 0 : i32
    return %c0_i32, %arg0, %c0_i32_0 : i32, i32, i32
  }
  func.func @transform_1(%arg0: i32) -> (i32, i32, i32) {
    %c0_i32 = arith.constant 0 : i32
    %c0_i32_0 = arith.constant 0 : i32
    %c0_i32_1 = arith.constant 0 : i32
    return %c0_i32, %arg0, %c0_i32_0 : i32, i32, i32
  }
  func.func @transform_2(%arg0: i32) -> (i32, i32, i32) {
    %c0_i32 = arith.constant 0 : i32
    %c0_i32_0 = arith.constant 0 : i32
    %c0_i32_1 = arith.constant 0 : i32
    return %c0_i32, %arg0, %c0_i32_0 : i32, i32, i32
  }
}

</mosaic_0001>

<bundles_post_ra>
// kernel: conditional_batchnorm2d.1
= control target key start
LH: loop header
LB: loop body
LE: loop exit
PB: predicated region body
PF: predicated region fallthrough
CT: control target
= control target key end

     0   :  { %vm19_vm0 = vcmask 1043456   ;;  %v139_v22 = vmov 0   ;;  %s140_s16 = smov 1   ;;  %v141_v38 = vmov 1   ;;  %v142_v43 = vmov 839922192   ;;  %s200_s0 = inlined_call_operand.vmem [shape: f32[2,4,256], index: 0, kind: input, shape index: {}]   ;;  %s201_s1 = inlined_call_operand.vmem [shape: f32[2,4,2], index: 1, kind: input, shape index: {}]   ;;  %s202_s2 = inlined_call_operand.vmem [shape: f32[2,4,256], index: 2, kind: output, shape index: {}]  }
   0x1   :  { %v161_v0 = vld [vmem:[%s200_s0] sm:$0xff]  ;;  %v166_v1 = vld [vmem:[%s200_s0 + $0x8] sm:$0xff]  ;;  %131 = vset.pattern.permute.xlu0 %v139_v22  ;;  %132 = vset.pattern.permute.xlu1 %v139_v22  ;;  %v78_v44 = vunpack.c.l.s4 %v142_v43  ;;  %v80_v45 = vlaneseq }
   0x2   :  { %v15_v2 = vcombine.high %v161_v0, %v161_v0  ;;  %v16_v3 = vcombine.high %v166_v1, %v166_v1  ;;  %v20_v4 = vsel %vm19_vm0, %v161_v0, 0.0  ;;  %v29_v5 = vmul.f32 %v161_v0, %v161_v0  ;;  %v53_v31 = vld [vmem:[%s201_s1] sm:$0xf]  ;;  %v54_v33 = vld [vmem:[%s201_s1 + $0x4] sm:$0xf] }
   0x3   :  { %v30_v6 = vmul.f32 %v166_v1, %v166_v1  ;;  %v23_v8 = vsel %vm19_vm0, %v166_v1, 0.0  ;;  %v79_v46 = vunpack.c.0.s8 %v78_v44  ;;  %v81_v47 = vshrl.u32 %v80_v45, 7 }
   0x4   :  { %v21_v7 = vsel %vm19_vm0, %v15_v2, 0.0  ;;  %v33_v10 = vcombine.high %v29_v5, %v29_v5  ;;  %v37_v12 = vsel %vm19_vm0, %v29_v5, 0.0  ;;  %v25_v13 = vsel %vm19_vm0, %v16_v3, 0.0 }
   0x5   :  { %v22_v9 = vadd.f32 %v21_v7, %v20_v4  ;;  %v34_v11 = vcombine.high %v30_v6, %v30_v6  ;;  %v40_v16 = vsel %vm19_vm0, %v30_v6, 0.0  ;;  %v82_v48 = vsub.s32 %v79_v46, %v81_v47 }
   0x6   :  { %v38_v15 = vsel %vm19_vm0, %v33_v10, 0.0 }
   0x7   :  { %v24_v14 = vadd.f32 %v23_v8, %v22_v9  ;;  %v39_v17 = vadd.f32 %v38_v15, %v37_v12  ;;  %v42_v19 = vsel %vm19_vm0, %v34_v11, 0.0 }
   0x9   :  { %v26_v18 = vadd.f32 %v25_v13, %v24_v14  ;;  %v41_v20 = vadd.f32 %v40_v16, %v39_v17 }
   0xb   :  { %27 = vadd.xlane.f32.xlu0 %v26_v18  ;;  %v43_v21 = vadd.f32 %v42_v19, %v41_v20 }
   0xf   :  { %44 = vadd.xlane.f32.xlu0 %v43_v21 }
  0x94   :  { %v28_v23 = vpop.xlane.xlu0 %27 }
  0x95   :  { %v46_v24 = vmul.f32 0.001953125, %v28_v23 }
  0x97   :  { %v48_v26 = vmul.f32 %v46_v24, %v46_v24 }
  0x98   :  { %v45_v25 = vpop.xlane.xlu0 %44 }
  0x99   :  { %v47_v27 = vmul.f32 0.001953125, %v45_v25 }
  0x9b   :  { %v49_v28 = vsub.f32 %v47_v27, %v48_v26 }
  0x9d   :  { %v50_v29 = vmax.f32 %v49_v28, 0.0 }
  0x9f   :  { %v51_v30 = vadd.f32 1e-05, %v50_v29 }
  0xa1   :  { %137 = vrsqrt.f32 %v51_v30 }
  0xae   :  { %v138_v32 = vpop.eup %137 }
  0xaf   :  { %v55_v34 = vmul.f32 %v138_v32, %v53_v31  ;;  %v56_v36 = vmul.f32 %v138_v32, %v54_v33 }
  0xb1   :  { %71 = vperm.xlu0 %131, %v55_v34   ;;  %v57_v35 = vmul.f32 %v55_v34, %v46_v24  ;;  %v58_v37 = vmul.f32 %v56_v36, %v46_v24 }
  0xb3   :  { %61 = vrot.lane.b32.xlu1 %v57_v35, %s140_s16 }
  0xb5   :  { %134 = vset.pattern.permute.xlu0 %v141_v38 }
  0xb7   :  { %63 = vrot.lane.b32.xlu1 %v58_v37, %s140_s16 }
  0xbb   :  { %75 = vperm.xlu1 %132, %v56_v36  }
  0xbf   :  { %133 = vset.pattern.permute.xlu1 %v141_v38 }
 0x125   :  { %v62_v39 = vpop.permute.xlu1 %61 }
 0x126   :  { %v67_v40 = vsub.f32 %v53_v31, %v62_v39 }
 0x128   :  { %97 = vperm.xlu1 %133, %v67_v40  }
 0x129   :  { %v64_v41 = vpop.permute.xlu1 %63 }
 0x12a   :  { %v68_v42 = vsub.f32 %v54_v33, %v64_v41 }
 0x12c   :  { %101 = vperm.xlu1 %133, %v68_v42   ;;  %v72_v49 = vpop.permute.xlu0 %71 }
 0x12d   :  { %v83_v51 = vrot.slane %v72_v49, %v82_v48 }
 0x12f   :  { %v93_v53 = vmul.f32 %v83_v51, %v161_v0 }
 0x136   :  { %v76_v50 = vpop.permute.xlu1 %75 }
 0x137   :  { %v90_v54 = vrot.slane %v76_v50, %v82_v48 }
 0x139   :  { %v94_v58 = vmul.f32 %v90_v54, %v166_v1 }
 0x1a3   :  { %v98_v52 = vpop.permute.xlu1 %97 }
 0x1a4   :  { %v109_v55 = vrot.slane %v98_v52, %v82_v48 }
 0x1a6   :  { %v119_v56 = vadd.f32 %v109_v55, %v93_v53 }
 0x1a7   :  { %v102_v57 = vpop.permute.xlu1 %101 }
 0x1a8   :  { %121 = vst [vmem:[%s202_s2] sm:$0xff] %v119_v56  ;;  %v116_v59 = vrot.slane %v102_v57, %v82_v48 }
 0x1aa   :  { %v120_v60 = vadd.f32 %v116_v59, %v94_v58 }
 0x1ac   :  { %122 = vst [vmem:[%s202_s2 + $0x8] sm:$0xff] %v120_v60 }

</bundles_post_ra>
